<compile_context>
chip_gen: v5e
topology: v5e:2x2
jax: 0.10.0
libtpu: 0.0.40
codegen_flags: <defaults>
</compile_context>

<pallas_src>
import functools

import numpy as np
import jax
import jax.numpy as jnp
from jax.experimental import pallas as pl
from jax.experimental.pallas import tpu as pltpu


def _cdiv(a, b):
    return -(-a // b)


def _vmem_capacity_bytes():
    """Physical VMEM per TensorCore; falls back to the 128 MiB (v5e/v6e) class."""
    try:
        cap = int(pltpu.get_tpu_info().vmem_capacity_bytes)
        if cap > 0:
            return cap
    except Exception:
        pass
    return 128 << 20


def _resident_spec(shape, single_buffer):
    """BlockSpec for a grid-invariant operand; single-buffered when supported."""
    idx = lambda r, s: (0, 0)
    buffered = getattr(pl, "Buffered", None)
    if single_buffer and buffered is not None:
        try:
            return pl.BlockSpec(shape, idx, pipeline_mode=buffered(1))
        except TypeError:
            pass
    return pl.BlockSpec(shape, idx)


def _attention3d_kernel(x_ref, m1_ref, w1rep_ref, w2t_ref, o_ref, acc_ref, *,
                        s_total, s_tile, inv_s, inv_temp, needs_mask,
                        unroll_cap):
    """Grid = (row_blocks, s_blocks); S (reduction) is the last, 'arbitrary' axis.

    x_ref    : (RB, S_TILE)   dense rows = (batch, channel) pairs
    m1_ref   : (BN, RB)       0/1 selector summing each batch's C rows
    w1rep_ref: (RB, HID)      fc1 weight^T tiled BN times along rows
    w2t_ref  : (HID, K)       fc2 weight^T
    o_ref    : (BN, K)        softmax attention weights
    acc_ref  : (RB, 128) f32  lane-dense running spatial sum per row
    """
    s_id = pl.program_id(1)
    last = pl.num_programs(1) - 1

    @pl.when(s_id == 0)
    def _init():
        acc_ref[...] = jnp.zeros_like(acc_ref)

    def accumulate_full_tile():
        # Lane-dense accumulation: VPU-only column-vreg adds; the one
        # cross-lane reduce is deferred to the epilogue.
        n_full = s_tile // 128
        rem = s_tile - n_full * 128
        if 0 < n_full <= unroll_cap:
            part = x_ref[:, 0:128].astype(jnp.float32)
            for j in range(1, n_full):
                part = part + x_ref[:, j * 128:(j + 1) * 128].astype(jnp.float32)
            acc_ref[...] += part
            if rem:  # full-extent S not a multiple of 128 (single-tile case)
                acc_ref[:, :rem] += x_ref[:, n_full * 128:s_tile].astype(jnp.float32)
        elif n_full > unroll_cap:
            # Too many chunks to unroll: let Mosaic's own lane reduction do it
            # (column-vreg VPU adds + one XLU reduce per 8 rows). f32 accum.
            acc_ref[:, 0:1] += jnp.sum(x_ref[...], axis=-1, keepdims=True,
                                       dtype=jnp.float32)
        else:  # s_tile < 128: single tiny full-extent tile
            acc_ref[:, :s_tile] += x_ref[...].astype(jnp.float32)

    if needs_mask:  # static: emitted only when S % S_TILE != 0
        @pl.when(s_id != last)
        def _full_tiles():
            accumulate_full_tile()

        @pl.when(s_id == last)
        def _ragged_tile():  # mask runs ONLY on the ragged last tile
            tile = x_ref[...]
            lane = jax.lax.broadcasted_iota(jnp.int32, tile.shape, 1)
            valid = (s_id * s_tile + lane) < s_total
            masked = jnp.where(valid, tile, jnp.zeros_like(tile))
            acc_ref[:, 0:1] += jnp.sum(masked, axis=-1, keepdims=True,
                                       dtype=jnp.float32)
    else:
        accumulate_full_tile()

    @pl.when(s_id == last)
    def _epilogue():
        sums = jnp.sum(acc_ref[...], axis=-1, keepdims=True)        # (RB, 1) f32
        # m1 @ (sums * w1rep) == reshape(sums, (BN, C)) @ w_fc1.T   (fc1, no bias)
        folded = sums * w1rep_ref[...]                               # (RB, HID)
        h = jnp.dot(m1_ref[...], folded,
                    preferred_element_type=jnp.float32)              # (BN, HID)
        h = jnp.maximum(h * jnp.float32(inv_s), 0.0)                 # mean + ReLU
        logits = jnp.dot(h, w2t_ref[...],
                         preferred_element_type=jnp.float32)         # (BN, K)
        z = logits * jnp.float32(inv_temp)                           # / temperature
        z = z - jnp.max(z, axis=-1, keepdims=True)                   # stable softmax
        e = jnp.exp(z)
        denom = jnp.sum(e, axis=-1, keepdims=True)
        o_ref[...] = (e * pl.reciprocal(denom)).astype(o_ref.dtype)


def attention3d_forward(x_ncdhw, w_fc1, w_fc2, temperature, *,
                        max_rows_per_block=1024, target_block_bytes=None):
    """x: (N, C, D, H, W). w_fc1: (hidden, C). w_fc2: (K, hidden). Returns (N, K)."""
    n, c, d, h, w = x_ncdhw.shape
    hid, c1 = w_fc1.shape
    k, hid2 = w_fc2.shape
    assert c1 == c and hid2 == hid
    s_total = d * h * w
    itemsize = jnp.dtype(x_ncdhw.dtype).itemsize

    # ---- Generation-aware VMEM budget & block-byte target.
    vmem_cap = _vmem_capacity_bytes()
    vmem_budget = int(vmem_cap * 0.85)            # leave ~15% headroom
    if target_block_bytes is None:
        if vmem_cap <= (64 << 20):                # v7x-class: 64 MiB / TC
            target_block_bytes = 14 << 20
        else:                                     # v5e / v6e: 128 MiB
            target_block_bytes = 16 << 20
    per_buffer_est = max(1 << 20,
                         min(target_block_bytes, (vmem_budget - (8 << 20)) // 2))

    # ---- Row (batch) blocking. Prefer >=2 row blocks (both v7x TensorCores
    # get work on the 'parallel' axis); when S must split anyway, prefer wide
    # S tiles over tall row blocks (longer DMA runs). bn multiple of 8 keeps
    # the x block sublane-aligned; single full-extent block is always legal.
    def s_width(rows):
        return max(128, (per_buffer_est // max(rows * itemsize, 1)) // 128 * 128)

    valid = [cand for cand in range(8, n, 8)
             if n % cand == 0 and cand * c <= max_rows_per_block]
    if valid:
        full = [cand for cand in valid if s_width(cand * c) >= s_total]
        bn = max(full) if full else min(valid)
    else:
        bn = n
    num_row_blocks = n // bn
    rb = bn * c                                   # rows per x block

    # ---- Spatial tiling: sized purely from the byte budget (no lane cap);
    # full-extent S whenever the double-buffered block fits.
    resident_bytes = 2 * 4 * (bn * rb + rb * hid + hid * k)   # conservative 2x
    out_bytes = 2 * bn * k * itemsize
    acc_bytes = rb * 128 * 4
    avail_x = vmem_budget - resident_bytes - out_bytes - acc_bytes - (2 << 20)
    per_buffer = max(rb * 128 * itemsize,
                     min(target_block_bytes, max(avail_x, 0) // 2))
    s_tile_cap = max(128, (per_buffer // max(rb * itemsize, 1)) // 128 * 128)
    if s_total <= s_tile_cap:
        s_tile = s_total                          # full extent: legal, no mask
    else:
        s_tile = _cdiv(_cdiv(s_total, _cdiv(s_total, s_tile_cap)), 128) * 128
        s_tile = min(s_tile, s_tile_cap)
    n_s = _cdiv(s_total, s_tile)
    needs_mask = (s_total % s_tile) != 0

    # Cap on statically unrolled 128-lane chunk adds (bounds emitted code size).
    unroll_cap = max(8, 32768 // max(rb, 1))

    # ---- Kernel operands built once in the wrapper (no in-kernel transposes).
    x2d = x_ncdhw.reshape(n * c, s_total)                          # dense (N*C, S)
    w1t = jnp.transpose(w_fc1).astype(jnp.float32)                 # (C, HID)
    w1rep = jnp.tile(w1t, (bn, 1))                                 # (RB, HID)
    w2t = jnp.transpose(w_fc2).astype(jnp.float32)                 # (HID, K)
    r_idx = np.arange(rb)
    m1 = jnp.asarray((r_idx[None, :] // c ==
                      np.arange(bn)[:, None]).astype(np.float32))  # (BN, RB)

    kernel = functools.partial(
        _attention3d_kernel,
        s_total=s_total, s_tile=s_tile,
        inv_s=1.0 / float(s_total), inv_temp=1.0 / float(temperature),
        needs_mask=needs_mask, unroll_cap=unroll_cap)

    block_bytes = rb * s_tile * itemsize
    vmem_limit = (2 * block_bytes + resident_bytes + out_bytes + acc_bytes
                  + (2 << 20))
    vmem_limit = int(min(max(vmem_limit, 16 << 20), vmem_budget))

    flops = (2 * n * c * s_total            # spatial reduction
             + 2 * n * rb * hid             # fc1 (selector matmul)
             + 2 * n * hid * k              # fc2
             + 6 * n * k)                   # softmax arithmetic
    cost = pl.CostEstimate(
        flops=int(flops),
        transcendentals=int(n * k),
        bytes_accessed=int(n * c * s_total * itemsize
                           + (m1.size + w1rep.size + w2t.size) * 4
                           + n * k * itemsize))

    def _call(single_buffer):
        grid_spec = pltpu.PrefetchScalarGridSpec(
            num_scalar_prefetch=0,
            grid=(num_row_blocks, n_s),               # reduction axis (S) last
            in_specs=[
                pl.BlockSpec((rb, s_tile), lambda r, s: (r, s)),   # x: pipelined
                _resident_spec((bn, rb), single_buffer),           # m1
                _resident_spec((rb, hid), single_buffer),          # w1rep
                _resident_spec((hid, k), single_buffer),           # w2t
            ],
            out_specs=pl.BlockSpec((bn, k), lambda r, s: (r, 0)),
            scratch_shapes=[pltpu.VMEM((rb, 128), jnp.float32)],
        )
        return pl.pallas_call(
            kernel,
            out_shape=jax.ShapeDtypeStruct((n, k), x_ncdhw.dtype),
            grid_spec=grid_spec,
            compiler_params=pltpu.CompilerParams(
                dimension_semantics=("parallel", "arbitrary"),
                vmem_limit_bytes=vmem_limit),
            cost_estimate=cost,
        )(x2d, m1, w1rep, w2t)

    try:
        return _call(single_buffer=True)
    except Exception:
        # Installed Pallas may not support single-buffered resident operands;
        # retry with default double buffering.
        return _call(single_buffer=False)


def _reference(x_ncdhw, w_fc1, w_fc2, temperature):
    # Pure-JAX reference mirroring the PyTorch module.
    pooled = jnp.mean(x_ncdhw, axis=(2, 3, 4))                    # (N, C)
    h = jnp.maximum(pooled @ w_fc1.T, 0.0)                        # (N, hidden)
    logits = h @ w_fc2.T                                          # (N, K)
    return jax.nn.softmax(logits / temperature, axis=1)


def _run_case(key, n, in_planes, ratios, K, temperature, dhw, **fwd_kwargs):
    if in_planes != 3:
        hidden_planes = int(in_planes * ratios) + 1
    else:
        hidden_planes = K
    kx, k1, k2 = jax.random.split(key, 3)
    d, h, w = dhw
    x = jax.random.normal(kx, (n, in_planes, d, h, w), dtype=jnp.float32)
    w_fc1 = jax.random.normal(k1, (hidden_planes, in_planes), dtype=jnp.float32) * 0.1
    w_fc2 = jax.random.normal(k2, (K, hidden_planes), dtype=jnp.float32) * 0.1

    out = jax.block_until_ready(
        attention3d_forward(x, w_fc1, w_fc2, temperature, **fwd_kwargs))
    ref = _reference(x, w_fc1, w_fc2, temperature)
    assert out.shape == (n, K)
    assert jnp.allclose(out, ref, atol=1e-5, rtol=1e-5), (out, ref)
    assert jnp.allclose(jnp.sum(out, axis=1), 1.0, atol=1e-5)


if __name__ == "__main__":
    key = jax.random.PRNGKey(0)
    k_a, k_b, k_c = jax.random.split(key, 3)
    # Module config (in_planes != 3 branch), temperature % 3 == 1.
    # Case 1: S = 64 < 128 -> single full-extent tile, sub-128-lane accumulate.
    _run_case(k_a, n=2, in_planes=4, ratios=0.25, K=4, temperature=34, dhw=(4, 4, 4))
    # Case 2: S = 3200 -> fits the byte budget, so a single full-extent S tile
    #         using the lane-dense chunked VPU accumulation path.
    _run_case(k_b, n=2, in_planes=8, ratios=0.25, K=4, temperature=31, dhw=(8, 20, 20))
    # Case 3: same shape with a tiny block-byte override to exercise the
    #         multi-tile pipelined path with a ragged, masked last S tile.
    _run_case(k_c, n=2, in_planes=8, ratios=0.25, K=4, temperature=34,
              dhw=(8, 20, 20), target_block_bytes=64 << 10)
    print("KERNEL_OK")
</pallas_src>

<mosaic_0001>
module attributes {stable_mosaic.version = 11 : i64} {
  func.func @_attention3d_kernel(%arg0: i32, %arg1: i32, %arg2: memref<8x64xf32, #tpu.memory_space<vmem>>, %arg3: memref<2x8xf32, #tpu.memory_space<vmem>>, %arg4: memref<8x2xf32, #tpu.memory_space<vmem>>, %arg5: memref<2x4xf32, #tpu.memory_space<vmem>>, %arg6: memref<2x4xf32, #tpu.memory_space<vmem>>, %arg7: memref<8x128xf32, #tpu.memory_space<vmem>>) attributes {dimension_semantics = [#tpu.dimension_semantics<parallel>, #tpu.dimension_semantics<arbitrary>], iteration_bounds = array<i64: 1, 1>, scalar_prefetch = 0 : i64, scratch_operands = 1 : i64, tpu.core_type = #tpu.core_type<tc>, window_params = [{transform_indices = @transform_0, window_bounds = array<i64: 8, 64>}, {pipeline_mode = #tpu.pipeline_mode<synchronous>, transform_indices = @transform_1, window_bounds = array<i64: 2, 8>}, {pipeline_mode = #tpu.pipeline_mode<synchronous>, transform_indices = @transform_2, window_bounds = array<i64: 8, 2>}, {pipeline_mode = #tpu.pipeline_mode<synchronous>, transform_indices = @transform_3, window_bounds = array<i64: 2, 4>}, {transform_indices = @transform_4, window_bounds = array<i64: 2, 4>}]} {
    %c0_i32 = arith.constant 0 : i32
    %0 = arith.cmpi eq, %arg1, %c0_i32 : i32
    %1 = arith.extui %0 : i1 to i32
    %c0_i32_0 = arith.constant 0 : i32
    %2 = arith.cmpi ne, %1, %c0_i32_0 : i32
    scf.if %2 {
      %cst = arith.constant 0.000000e+00 : f32
      %10 = vector.broadcast %cst : f32 to vector<8x128xf32>
      %c0_8 = arith.constant 0 : index
      %c0_9 = arith.constant 0 : index
      %11 = vector.load %arg7[%c0_8, %c0_9] : memref<8x128xf32, #tpu.memory_space<vmem>>, vector<8x128xf32>
      tpu.vector_store %arg7[%c0_8, %c0_9], %10 {strides = array<i32>} : memref<8x128xf32, #tpu.memory_space<vmem>>, vector<8x128xf32>,
    } else {
    }
    %c0 = arith.constant 0 : index
    %c0_1 = arith.constant 0 : index
    %3 = vector.load %arg7[%c0, %c0_1] : memref<8x128xf32, #tpu.memory_space<vmem>>, vector<8x64xf32>
    %c0_2 = arith.constant 0 : index
    %c0_3 = arith.constant 0 : index
    %4 = vector.load %arg2[%c0_2, %c0_3] : memref<8x64xf32, #tpu.memory_space<vmem>>, vector<8x64xf32>
    %5 = arith.addf %3, %4 : vector<8x64xf32>
    %c0_4 = arith.constant 0 : index
    %c0_5 = arith.constant 0 : index
    %6 = vector.load %arg7[%c0_4, %c0_5] : memref<8x128xf32, #tpu.memory_space<vmem>>, vector<8x64xf32>
    tpu.vector_store %arg7[%c0_4, %c0_5], %5 {strides = array<i32>} : memref<8x128xf32, #tpu.memory_space<vmem>>, vector<8x64xf32>,
    %c0_i32_6 = arith.constant 0 : i32
    %7 = arith.cmpi eq, %arg1, %c0_i32_6 : i32
    %8 = arith.extui %7 : i1 to i32
    %c0_i32_7 = arith.constant 0 : i32
    %9 = arith.cmpi ne, %8, %c0_i32_7 : i32
    scf.if %9 {
      %c0_8 = arith.constant 0 : index
      %c0_9 = arith.constant 0 : index
      %10 = vector.load %arg7[%c0_8, %c0_9] : memref<8x128xf32, #tpu.memory_space<vmem>>, vector<8x128xf32>
      %cst = arith.constant dense<0.000000e+00> : vector<8xf32>
      %11 = vector.multi_reduction <add>, %10, %cst [1] : vector<8x128xf32> to vector<8xf32>
      %12 = vector.shape_cast %11 : vector<8xf32> to vector<8x1xf32>
      %c0_10 = arith.constant 0 : index
      %c0_11 = arith.constant 0 : index
      %13 = vector.load %arg4[%c0_10, %c0_11] : memref<8x2xf32, #tpu.memory_space<vmem>>, vector<8x2xf32>
      %14 = vector.broadcast %12 : vector<8x1xf32> to vector<8x2xf32>
      %15 = arith.mulf %14, %13 : vector<8x2xf32>
      %c0_12 = arith.constant 0 : index
      %c0_13 = arith.constant 0 : index
      %16 = vector.load %arg3[%c0_12, %c0_13] : memref<2x8xf32, #tpu.memory_space<vmem>>, vector<2x8xf32>
      %cst_14 = arith.constant dense<0.000000e+00> : vector<2x2xf32>
      %17 = tpu.matmul %16, %15, %cst_14 {dimension_numbers = #tpu.dot_dimension_numbers<[1], [0], [0], [1], [0, 0, 1, 1], [], []>} : vector<2x8xf32>, vector<8x2xf32>, vector<2x2xf32> -> vector<2x2xf32>
      %cst_15 = arith.constant 1.562500e-02 : f32
      %18 = vector.broadcast %cst_15 : f32 to vector<2x2xf32>
      %19 = arith.mulf %17, %18 : vector<2x2xf32>
      %cst_16 = arith.constant 0.000000e+00 : f32
      %20 = vector.broadcast %cst_16 : f32 to vector<2x2xf32>
      %21 = arith.maximumf %19, %20 : vector<2x2xf32>
      %c0_17 = arith.constant 0 : index
      %c0_18 = arith.constant 0 : index
      %22 = vector.load %arg5[%c0_17, %c0_18] : memref<2x4xf32, #tpu.memory_space<vmem>>, vector<2x4xf32>
      %cst_19 = arith.constant dense<0.000000e+00> : vector<2x4xf32>
      %23 = tpu.matmul %21, %22, %cst_19 {dimension_numbers = #tpu.dot_dimension_numbers<[1], [0], [0], [1], [0, 0, 1, 1], [], []>} : vector<2x2xf32>, vector<2x4xf32>, vector<2x4xf32> -> vector<2x4xf32>
      %cst_20 = arith.constant 0.0294117648 : f32
      %24 = vector.broadcast %cst_20 : f32 to vector<2x4xf32>
      %25 = arith.mulf %23, %24 : vector<2x4xf32>
      %cst_21 = arith.constant dense<0xFF800000> : vector<2xf32>
      %26 = vector.multi_reduction <maximumf>, %25, %cst_21 [1] : vector<2x4xf32> to vector<2xf32>
      %27 = vector.shape_cast %26 : vector<2xf32> to vector<2x1xf32>
      %28 = vector.broadcast %27 : vector<2x1xf32> to vector<2x4xf32>
      %29 = arith.subf %25, %28 : vector<2x4xf32>
      %30 = math.exp %29 : vector<2x4xf32>
      %cst_22 = arith.constant dense<0.000000e+00> : vector<2xf32>
      %31 = vector.multi_reduction <add>, %30, %cst_22 [1] : vector<2x4xf32> to vector<2xf32>
      %32 = vector.shape_cast %31 : vector<2xf32> to vector<2x1xf32>
      %33 = tpu.reciprocal %32 : vector<2x1xf32> -> vector<2x1xf32>
      %34 = vector.broadcast %33 : vector<2x1xf32> to vector<2x4xf32>
      %35 = arith.mulf %30, %34 : vector<2x4xf32>
      %c0_23 = arith.constant 0 : index
      %c0_24 = arith.constant 0 : index
      %36 = vector.load %arg6[%c0_23, %c0_24] : memref<2x4xf32, #tpu.memory_space<vmem>>, vector<2x4xf32>
      tpu.vector_store %arg6[%c0_23, %c0_24], %35 {strides = array<i32>} : memref<2x4xf32, #tpu.memory_space<vmem>>, vector<2x4xf32>,
    } else {
    }
    return
  }
  func.func @transform_0(%arg0: i32, %arg1: i32) -> (i32, i32) {
    %c0_i32 = arith.constant 0 : i32
    return %arg0, %arg1 : i32, i32
  }
  func.func @transform_1(%arg0: i32, %arg1: i32) -> (i32, i32) {
    %c0_i32 = arith.constant 0 : i32
    %c0_i32_0 = arith.constant 0 : i32
    %c0_i32_1 = arith.constant 0 : i32
    return %c0_i32, %c0_i32_0 : i32, i32
  }
  func.func @transform_2(%arg0: i32, %arg1: i32) -> (i32, i32) {
    %c0_i32 = arith.constant 0 : i32
    %c0_i32_0 = arith.constant 0 : i32
    %c0_i32_1 = arith.constant 0 : i32
    return %c0_i32, %c0_i32_0 : i32, i32
  }
  func.func @transform_3(%arg0: i32, %arg1: i32) -> (i32, i32) {
    %c0_i32 = arith.constant 0 : i32
    %c0_i32_0 = arith.constant 0 : i32
    %c0_i32_1 = arith.constant 0 : i32
    return %c0_i32, %c0_i32_0 : i32, i32
  }
  func.func @transform_4(%arg0: i32, %arg1: i32) -> (i32, i32) {
    %c0_i32 = arith.constant 0 : i32
    %c0_i32_0 = arith.constant 0 : i32
    return %arg0, %c0_i32 : i32, i32
  }
}

module attributes {stable_mosaic.version = 11 : i64} {
  func.func @_attention3d_kernel(%arg0: i32, %arg1: i32, %arg2: memref<8x64xf32, #tpu.memory_space<vmem>>, %arg3: memref<2x8xf32, #tpu.memory_space<vmem>>, %arg4: memref<8x2xf32, #tpu.memory_space<vmem>>, %arg5: memref<2x4xf32, #tpu.memory_space<vmem>>, %arg6: memref<2x4xf32, #tpu.memory_space<vmem>>, %arg7: memref<8x128xf32, #tpu.memory_space<vmem>>) attributes {dimension_semantics = [#tpu.dimension_semantics<parallel>, #tpu.dimension_semantics<arbitrary>], iteration_bounds = array<i64: 1, 1>, scalar_prefetch = 0 : i64, scratch_operands = 1 : i64, tpu.core_type = #tpu.core_type<tc>, window_params = [{transform_indices = @transform_0, window_bounds = array<i64: 8, 64>}, {pipeline_mode = #tpu.pipeline_mode<synchronous>, transform_indices = @transform_1, window_bounds = array<i64: 2, 8>}, {pipeline_mode = #tpu.pipeline_mode<synchronous>, transform_indices = @transform_2, window_bounds = array<i64: 8, 2>}, {pipeline_mode = #tpu.pipeline_mode<synchronous>, transform_indices = @transform_3, window_bounds = array<i64: 2, 4>}, {transform_indices = @transform_4, window_bounds = array<i64: 2, 4>}]} {
    %c0_i32 = arith.constant 0 : i32
    %0 = arith.cmpi eq, %arg1, %c0_i32 : i32
    %1 = arith.extui %0 : i1 to i32
    %c0_i32_0 = arith.constant 0 : i32
    %2 = arith.cmpi ne, %1, %c0_i32_0 : i32
    scf.if %2 {
      %cst = arith.constant 0.000000e+00 : f32
      %10 = vector.broadcast %cst : f32 to vector<8x128xf32>
      %c0_8 = arith.constant 0 : index
      %c0_9 = arith.constant 0 : index
      %11 = vector.load %arg7[%c0_8, %c0_9] : memref<8x128xf32, #tpu.memory_space<vmem>>, vector<8x128xf32>
      tpu.vector_store %arg7[%c0_8, %c0_9], %10 {strides = array<i32>} : memref<8x128xf32, #tpu.memory_space<vmem>>, vector<8x128xf32>,
    } else {
    }
    %c0 = arith.constant 0 : index
    %c0_1 = arith.constant 0 : index
    %3 = vector.load %arg7[%c0, %c0_1] : memref<8x128xf32, #tpu.memory_space<vmem>>, vector<8x64xf32>
    %c0_2 = arith.constant 0 : index
    %c0_3 = arith.constant 0 : index
    %4 = vector.load %arg2[%c0_2, %c0_3] : memref<8x64xf32, #tpu.memory_space<vmem>>, vector<8x64xf32>
    %5 = arith.addf %3, %4 : vector<8x64xf32>
    %c0_4 = arith.constant 0 : index
    %c0_5 = arith.constant 0 : index
    %6 = vector.load %arg7[%c0_4, %c0_5] : memref<8x128xf32, #tpu.memory_space<vmem>>, vector<8x64xf32>
    tpu.vector_store %arg7[%c0_4, %c0_5], %5 {strides = array<i32>} : memref<8x128xf32, #tpu.memory_space<vmem>>, vector<8x64xf32>,
    %c0_i32_6 = arith.constant 0 : i32
    %7 = arith.cmpi eq, %arg1, %c0_i32_6 : i32
    %8 = arith.extui %7 : i1 to i32
    %c0_i32_7 = arith.constant 0 : i32
    %9 = arith.cmpi ne, %8, %c0_i32_7 : i32
    scf.if %9 {
      %c0_8 = arith.constant 0 : index
      %c0_9 = arith.constant 0 : index
      %10 = vector.load %arg7[%c0_8, %c0_9] : memref<8x128xf32, #tpu.memory_space<vmem>>, vector<8x128xf32>
      %cst = arith.constant dense<0.000000e+00> : vector<8xf32>
      %11 = vector.multi_reduction <add>, %10, %cst [1] : vector<8x128xf32> to vector<8xf32>
      %12 = vector.shape_cast %11 : vector<8xf32> to vector<8x1xf32>
      %c0_10 = arith.constant 0 : index
      %c0_11 = arith.constant 0 : index
      %13 = vector.load %arg4[%c0_10, %c0_11] : memref<8x2xf32, #tpu.memory_space<vmem>>, vector<8x2xf32>
      %14 = vector.broadcast %12 : vector<8x1xf32> to vector<8x2xf32>
      %15 = arith.mulf %14, %13 : vector<8x2xf32>
      %c0_12 = arith.constant 0 : index
      %c0_13 = arith.constant 0 : index
      %16 = vector.load %arg3[%c0_12, %c0_13] : memref<2x8xf32, #tpu.memory_space<vmem>>, vector<2x8xf32>
      %cst_14 = arith.constant dense<0.000000e+00> : vector<2x2xf32>
      %17 = tpu.matmul %16, %15, %cst_14 {dimension_numbers = #tpu.dot_dimension_numbers<[1], [0], [0], [1], [0, 0, 1, 1], [], []>} : vector<2x8xf32>, vector<8x2xf32>, vector<2x2xf32> -> vector<2x2xf32>
      %cst_15 = arith.constant 1.562500e-02 : f32
      %18 = vector.broadcast %cst_15 : f32 to vector<2x2xf32>
      %19 = arith.mulf %17, %18 : vector<2x2xf32>
      %cst_16 = arith.constant 0.000000e+00 : f32
      %20 = vector.broadcast %cst_16 : f32 to vector<2x2xf32>
      %21 = arith.maximumf %19, %20 : vector<2x2xf32>
      %c0_17 = arith.constant 0 : index
      %c0_18 = arith.constant 0 : index
      %22 = vector.load %arg5[%c0_17, %c0_18] : memref<2x4xf32, #tpu.memory_space<vmem>>, vector<2x4xf32>
      %cst_19 = arith.constant dense<0.000000e+00> : vector<2x4xf32>
      %23 = tpu.matmul %21, %22, %cst_19 {dimension_numbers = #tpu.dot_dimension_numbers<[1], [0], [0], [1], [0, 0, 1, 1], [], []>} : vector<2x2xf32>, vector<2x4xf32>, vector<2x4xf32> -> vector<2x4xf32>
      %cst_20 = arith.constant 0.0294117648 : f32
      %24 = vector.broadcast %cst_20 : f32 to vector<2x4xf32>
      %25 = arith.mulf %23, %24 : vector<2x4xf32>
      %cst_21 = arith.constant dense<0xFF800000> : vector<2xf32>
      %26 = vector.multi_reduction <maximumf>, %25, %cst_21 [1] : vector<2x4xf32> to vector<2xf32>
      %27 = vector.shape_cast %26 : vector<2xf32> to vector<2x1xf32>
      %28 = vector.broadcast %27 : vector<2x1xf32> to vector<2x4xf32>
      %29 = arith.subf %25, %28 : vector<2x4xf32>
      %30 = math.exp %29 : vector<2x4xf32>
      %cst_22 = arith.constant dense<0.000000e+00> : vector<2xf32>
      %31 = vector.multi_reduction <add>, %30, %cst_22 [1] : vector<2x4xf32> to vector<2xf32>
      %32 = vector.shape_cast %31 : vector<2xf32> to vector<2x1xf32>
      %33 = tpu.reciprocal %32 : vector<2x1xf32> -> vector<2x1xf32>
      %34 = vector.broadcast %33 : vector<2x1xf32> to vector<2x4xf32>
      %35 = arith.mulf %30, %34 : vector<2x4xf32>
      %c0_23 = arith.constant 0 : index
      %c0_24 = arith.constant 0 : index
      %36 = vector.load %arg6[%c0_23, %c0_24] : memref<2x4xf32, #tpu.memory_space<vmem>>, vector<2x4xf32>
      tpu.vector_store %arg6[%c0_23, %c0_24], %35 {strides = array<i32>} : memref<2x4xf32, #tpu.memory_space<vmem>>, vector<2x4xf32>,
    } else {
    }
    return
  }
  func.func @transform_0(%arg0: i32, %arg1: i32) -> (i32, i32) {
    %c0_i32 = arith.constant 0 : i32
    return %arg0, %arg1 : i32, i32
  }
  func.func @transform_1(%arg0: i32, %arg1: i32) -> (i32, i32) {
    %c0_i32 = arith.constant 0 : i32
    %c0_i32_0 = arith.constant 0 : i32
    %c0_i32_1 = arith.constant 0 : i32
    return %c0_i32, %c0_i32_0 : i32, i32
  }
  func.func @transform_2(%arg0: i32, %arg1: i32) -> (i32, i32) {
    %c0_i32 = arith.constant 0 : i32
    %c0_i32_0 = arith.constant 0 : i32
    %c0_i32_1 = arith.constant 0 : i32
    return %c0_i32, %c0_i32_0 : i32, i32
  }
  func.func @transform_3(%arg0: i32, %arg1: i32) -> (i32, i32) {
    %c0_i32 = arith.constant 0 : i32
    %c0_i32_0 = arith.constant 0 : i32
    %c0_i32_1 = arith.constant 0 : i32
    return %c0_i32, %c0_i32_0 : i32, i32
  }
  func.func @transform_4(%arg0: i32, %arg1: i32) -> (i32, i32) {
    %c0_i32 = arith.constant 0 : i32
    %c0_i32_0 = arith.constant 0 : i32
    return %arg0, %c0_i32 : i32, i32
  }
}

</mosaic_0001>

<bundles_post_ra>
// kernel: tpu_custom_call.1
= control target key start
LH: loop header
LB: loop body
LE: loop exit
PB: predicated region body
PF: predicated region fallthrough
CT: control target
= control target key end

     0   :  { %vm26_vm0 = vcmask 523264   ;;  %s215_s0 = inlined_call_operand.vmem [shape: f32[8,64], index: 0, kind: input, shape index: {}]   ;;  %s216_s1 = inlined_call_operand.vmem [shape: f32[2,8], index: 1, kind: input, shape index: {}]   ;;  %s217_s2 = inlined_call_operand.vmem [shape: f32[8,2], index: 2, kind: input, shape index: {}]   ;;  %s218_s3 = inlined_call_operand.vmem [shape: f32[2,4], index: 3, kind: input, shape index: {}]   ;;  %s219_s4 = inlined_call_operand.hbm [shape: f32[2,4], index: 4, kind: output, shape index: {}]  }
   0x1   :  { %v24_v0 = vld [vmem:[%s215_s0] sm:$0xff] }
   0x2   :  { %9 = vsyncpa [#allocation4], 0  ;;  %v170_v1 = vmov 0.0   ;;  %v34_v3 = vld [vmem:[%s217_s2] sm:$0xff]  ;;  %vm37_vm1 = vcmask 64512   ;;  %vm68_vm2 = vcmask 1041408  }
   0x3   :  { %22 = vst [vmem:[#allocation2] sm:$0xff] %v170_v1  ;;  %v36_v6 = vld [vmem:[%s216_s1] sm:$0x3]  ;;  %vm64_vm3 = vcmask 15360   ;;  %vm93_vm4 = vcmask 25600   ;;  %s171_s1 = smov [#allocation3]  }
   0x4   :  { %27 = vst.msk [vmem:[#allocation2] sm:$0xff] %vm26_vm0, %v24_v0  ;;  %v63_v7 = vld [vmem:[%s218_s3] sm:$0x3]  ;;  %s124_s2 = sshll.u32 %s171_s1, 4  ;;  %s126_s23 = sshll.u32 %s219_s4, 4  ;;  %s125_s2 = int_to_ptr.vmem [resolvable:$true] %s124_s2  ;;  %s127_s23 = int_to_ptr.hbm [resolvable:$true] %s126_s23 }
   0x5   :  { %136 = vmatpush.msk.msra.mxu1 %vm68_vm2, %v63_v7 }
   0xb   :  { %v31_v2 = vld [vmem:[#allocation2] sm:$0xff] }
   0xc   :  { %32 = vadd.xlane.f32.xlu0 %v31_v2 }
  0x7f   :  { %v33_v4 = vpop.xlane.xlu0 %32 }
  0x80   :  { %v35_v5 = vmul.f32 %v34_v3, %v33_v4 }
  0x82   :  { %56 = vmatpush.msra.mxu0 %v35_v5 }
  0x83   :  { %135 = vmatmul.msk.f32.vlgmr.msra.gmra.mxu0 %vm37_vm1, %v36_v6 }
 0x100   :  { %v58_v8 = vpop.f32.mrf.mxu0 }
 0x101   :  { %v61_v9 = vmul.f32 0.015625, %v58_v8 }
 0x103   :  { %v62_v10 = vmax.f32 %v61_v9, 0.0 }
 0x105   :  { %137 = vmatmul.msk.f32.vlgmr.msra.gmra.mxu1 %vm64_vm3, %v62_v10 }
 0x182   :  { %v89_v11 = vpop.f32.mrf.mxu1 }
 0x183   :  { %v92_v12 = vmul.f32 0.029411765, %v89_v11 }
 0x185   :  { %v94_v13 = vsel %vm93_vm4, %v92_v12, -inf }
 0x186   :  { %95 = vmax.xlane.f32.xlu0 %v94_v13 }
 0x1f9   :  { %v96_v14 = vpop.xlane.xlu0 %95 }
 0x1fa   :  { %v97_v15 = vsub.f32 %v92_v12, %v96_v14 }
 0x1fc   :  { %v98_v16 = vmul.f32 1.442695, %v97_v15 }
 0x1fe   :  { %140 = vpow2.f32 %v98_v16 }
 0x204   :  { %v141_v17 = vpop.eup %140 }
 0x205   :  { %v100_v18 = vsel %vm93_vm4, %v141_v17, 0.0 }
 0x206   :  { %101 = vadd.xlane.f32.xlu1 %v100_v18 }
 0x279   :  { %v102_v19 = vpop.xlane.xlu1 %101 }
 0x27a   :  { %142 = vrcp.f32 %v102_v19  ;;  %v114_v23 = vand.u32 2147483648, %v102_v19  ;;  %v112_v25 = vand.u32 2147483647, %v102_v19  ;;  %vm108_vm6 = vweird.f32 %v102_v19 }
 0x27c   :  { %v115_v27 = vor.u32 1.1754944e-38, %v114_v23  ;;  %vm113_vm8 = vcmp.eq.f32.partialorder %v112_v25, 8.507059e+37 }
 0x280   :  { %v143_v20 = vpop.eup %142 }
 0x281   :  { %v104_v21 = vmul.f32 %v143_v20, %v102_v19  ;;  %vm109_vm5 = vweird.f32 %v143_v20 }
 0x282   :  { %vm110_vm7 = vmor %vm108_vm6, %vm109_vm5 }
 0x283   :  { %v105_v22 = vsub.f32 1.0, %v104_v21 }
 0x285   :  { %v106_v24 = vmul.f32 %v143_v20, %v105_v22 }
 0x287   :  { %v107_v26 = vadd.f32 %v143_v20, %v106_v24 }
 0x289   :  { %v111_v28 = vsel %vm110_vm7, %v143_v20, %v107_v26 }
 0x28a   :  { %v116_v29 = vsel %vm113_vm8, %v115_v27, %v111_v28 }
 0x28b   :  { %v117_v30 = vmul.f32 %v141_v17, %v116_v29 }
 0x28d   :  { %118 = vst.msk [vmem:[#allocation3] sm:$0x3] %vm93_vm4, %v117_v30 }
 0x28e   :  { %129 = dma.vmem_to_hbm [thread:$0]  %s125_s2, 32, %s127_s23, [#allocation4]  }
 0x28f   :  { %168 = dma.done.wait [#allocation4], 32  }
 0x290   :  { %169 = vsyncadd [#allocation4], 4294967264 }
 0x291   :  { %134 = vsyncpa [#allocation4], 1 }

// kernel: tpu_custom_call.1
= control target key start
LH: loop header
LB: loop body
LE: loop exit
PB: predicated region body
PF: predicated region fallthrough
CT: control target
= control target key end

     0   :  { %vm26_vm0 = vcmask 523264   ;;  %s215_s0 = inlined_call_operand.vmem [shape: f32[8,64], index: 0, kind: input, shape index: {}]   ;;  %s216_s1 = inlined_call_operand.vmem [shape: f32[2,8], index: 1, kind: input, shape index: {}]   ;;  %s217_s2 = inlined_call_operand.vmem [shape: f32[8,2], index: 2, kind: input, shape index: {}]   ;;  %s218_s3 = inlined_call_operand.vmem [shape: f32[2,4], index: 3, kind: input, shape index: {}]   ;;  %s219_s4 = inlined_call_operand.hbm [shape: f32[2,4], index: 4, kind: output, shape index: {}]  }
   0x1   :  { %v24_v0 = vld [vmem:[%s215_s0] sm:$0xff] }
   0x2   :  { %9 = vsyncpa [#allocation4], 0  ;;  %v170_v1 = vmov 0.0   ;;  %v34_v3 = vld [vmem:[%s217_s2] sm:$0xff]  ;;  %vm37_vm1 = vcmask 64512   ;;  %vm68_vm2 = vcmask 1041408  }
   0x3   :  { %22 = vst [vmem:[#allocation2] sm:$0xff] %v170_v1  ;;  %v36_v6 = vld [vmem:[%s216_s1] sm:$0x3]  ;;  %vm64_vm3 = vcmask 15360   ;;  %vm93_vm4 = vcmask 25600   ;;  %s171_s1 = smov [#allocation3]  }
   0x4   :  { %27 = vst.msk [vmem:[#allocation2] sm:$0xff] %vm26_vm0, %v24_v0  ;;  %v63_v7 = vld [vmem:[%s218_s3] sm:$0x3]  ;;  %s124_s2 = sshll.u32 %s171_s1, 4  ;;  %s126_s23 = sshll.u32 %s219_s4, 4  ;;  %s125_s2 = int_to_ptr.vmem [resolvable:$true] %s124_s2  ;;  %s127_s23 = int_to_ptr.hbm [resolvable:$true] %s126_s23 }
   0x5   :  { %136 = vmatpush.msk.msra.mxu1 %vm68_vm2, %v63_v7 }
   0xb   :  { %v31_v2 = vld [vmem:[#allocation2] sm:$0xff] }
   0xc   :  { %32 = vadd.xlane.f32.xlu0 %v31_v2 }
  0x7f   :  { %v33_v4 = vpop.xlane.xlu0 %32 }
  0x80   :  { %v35_v5 = vmul.f32 %v34_v3, %v33_v4 }
  0x82   :  { %56 = vmatpush.msra.mxu0 %v35_v5 }
  0x83   :  { %135 = vmatmul.msk.f32.vlgmr.msra.gmra.mxu0 %vm37_vm1, %v36_v6 }
 0x100   :  { %v58_v8 = vpop.f32.mrf.mxu0 }
 0x101   :  { %v61_v9 = vmul.f32 0.015625, %v58_v8 }
 0x103   :  { %v62_v10 = vmax.f32 %v61_v9, 0.0 }
 0x105   :  { %137 = vmatmul.msk.f32.vlgmr.msra.gmra.mxu1 %vm64_vm3, %v62_v10 }
 0x182   :  { %v89_v11 = vpop.f32.mrf.mxu1 }
 0x183   :  { %v92_v12 = vmul.f32 0.029411765, %v89_v11 }
 0x185   :  { %v94_v13 = vsel %vm93_vm4, %v92_v12, -inf }
 0x186   :  { %95 = vmax.xlane.f32.xlu0 %v94_v13 }
 0x1f9   :  { %v96_v14 = vpop.xlane.xlu0 %95 }
 0x1fa   :  { %v97_v15 = vsub.f32 %v92_v12, %v96_v14 }
 0x1fc   :  { %v98_v16 = vmul.f32 1.442695, %v97_v15 }
 0x1fe   :  { %140 = vpow2.f32 %v98_v16 }
 0x204   :  { %v141_v17 = vpop.eup %140 }
 0x205   :  { %v100_v18 = vsel %vm93_vm4, %v141_v17, 0.0 }
 0x206   :  { %101 = vadd.xlane.f32.xlu1 %v100_v18 }
 0x279   :  { %v102_v19 = vpop.xlane.xlu1 %101 }
 0x27a   :  { %142 = vrcp.f32 %v102_v19  ;;  %v114_v23 = vand.u32 2147483648, %v102_v19  ;;  %v112_v25 = vand.u32 2147483647, %v102_v19  ;;  %vm108_vm6 = vweird.f32 %v102_v19 }
 0x27c   :  { %v115_v27 = vor.u32 1.1754944e-38, %v114_v23  ;;  %vm113_vm8 = vcmp.eq.f32.partialorder %v112_v25, 8.507059e+37 }
 0x280   :  { %v143_v20 = vpop.eup %142 }
 0x281   :  { %v104_v21 = vmul.f32 %v143_v20, %v102_v19  ;;  %vm109_vm5 = vweird.f32 %v143_v20 }
 0x282   :  { %vm110_vm7 = vmor %vm108_vm6, %vm109_vm5 }
 0x283   :  { %v105_v22 = vsub.f32 1.0, %v104_v21 }
 0x285   :  { %v106_v24 = vmul.f32 %v143_v20, %v105_v22 }
 0x287   :  { %v107_v26 = vadd.f32 %v143_v20, %v106_v24 }
 0x289   :  { %v111_v28 = vsel %vm110_vm7, %v143_v20, %v107_v26 }
 0x28a   :  { %v116_v29 = vsel %vm113_vm8, %v115_v27, %v111_v28 }
 0x28b   :  { %v117_v30 = vmul.f32 %v141_v17, %v116_v29 }
 0x28d   :  { %118 = vst.msk [vmem:[#allocation3] sm:$0x3] %vm93_vm4, %v117_v30 }
 0x28e   :  { %129 = dma.vmem_to_hbm [thread:$0]  %s125_s2, 32, %s127_s23, [#allocation4]  }
 0x28f   :  { %168 = dma.done.wait [#allocation4], 32  }
 0x290   :  { %169 = vsyncadd [#allocation4], 4294967264 }
 0x291   :  { %134 = vsyncpa [#allocation4], 1 }

</bundles_post_ra>
